<compile_context>
chip_gen: v7x
topology: tpu7x:2x2x1
jax: 0.10.0
libtpu: 0.0.40
codegen_flags: <defaults>
</compile_context>

<pallas_src>
import functools

import jax
import jax.numpy as jnp
from jax.experimental import pallas as pl
from jax.experimental.pallas import tpu as pltpu

LEAKY_SLOPE = 0.01   # torch.nn.LeakyReLU default negative_slope
LANE = 128           # lane pad; TODO(synk): prefer 256 on v6e/v7x (2x256x256 MXU) for odd 128-multiples
F32_SUB = 8          # f32 sublane pack


def _round_up(n, m):
    return ((n + m - 1) // m) * m


def _vmem_capacity_bytes():
    try:
        return int(pltpu.get_tpu_info().vmem_capacity_bytes)
    except Exception:
        return 64 << 20   # conservative fallback (v7x physical VMEM per TC)


def _spec(shape, index_map, *, single_buffered=False):
    """BlockSpec helper: single-buffer block-invariant inputs when supported."""
    if single_buffered:
        try:
            return pl.BlockSpec(shape, index_map, pipeline_mode=pl.Buffered(1))
        except TypeError:   # older jax without pipeline_mode -> default double-buffering
            pass
    return pl.BlockSpec(shape, index_map)


def _vmem_need_bytes(block_b, block_h, Dp, w_item, resident):
    n_wbuf = 1 if resident else 2
    act = 2 * 2 * block_b * Dp * 4                       # x/out tiles, double-buffered, f32
    wgt = n_wbuf * 2 * Dp * block_h * w_item             # w1 + w2 blocks
    bias = n_wbuf * 8 * block_h * 4 + 8 * Dp * 4         # sublane-padded bias tiles
    acc = block_b * Dp * 4                               # f32 accumulator scratch
    inter = (block_b * block_h * 4 + block_b * Dp * 4    # h (f32) + dot temporary (f32)
             + block_b * (Dp + block_h) * w_item)        # matmul-dtype casts of x and h
    return act + wgt + bias + acc + inter


def _choose_block_h(Dp, block_b, w_item, budget):
    cands = [Dp] + [c for c in (8192, 4096, 2048, 1024, 512, 256, 128)
                    if c < Dp and Dp % c == 0]
    for bh in cands:
        if _vmem_need_bytes(block_b, bh, Dp, w_item, resident=(bh == Dp)) <= budget:
            return bh
    # TODO(synk): for extreme D also shrink block_b and/or tile the output-N dimension.
    return cands[-1]


def _residual_block_kernel(x_ref, w1_ref, b1_ref, w2_ref, b2_ref, o_ref,
                           acc_ref, *, matmul_dtype):
    j = pl.program_id(1)                 # hidden-dim tile index (reduction axis)

    @pl.when(j == 0)
    def _():
        acc_ref[...] = jnp.zeros_like(acc_ref)

    x = x_ref[...]                                           # (TB, Dp) f32
    # Linear1 (hidden slice j) on the MXU, f32 accumulation.
    h = jnp.dot(x.astype(matmul_dtype), w1_ref[...],
                preferred_element_type=jnp.float32)
    h = h + b1_ref[...]                                      # (1, TH) broadcast, f32
    h = jnp.where(h >= 0, h, LEAKY_SLOPE * h)                # LeakyReLU on the VPU
    # Partial Linear2: accumulate over hidden tiles in f32 scratch.
    acc_ref[...] += jnp.dot(h.astype(matmul_dtype), w2_ref[...],
                            preferred_element_type=jnp.float32)

    @pl.when(j == pl.num_programs(1) - 1)
    def _():
        # Residual + bias2 in f32, then cast to the output dtype.
        o_ref[...] = (x + acc_ref[...] + b2_ref[...]).astype(o_ref.dtype)


def prepare_params(w1, b1, w2, b2, *, matmul_dtype=jnp.bfloat16, lane_multiple=LANE):
    """Pad + cast parameters once (hoisted out of the per-call path).

    w1, w2 must be laid out (in, out), i.e. the transpose of nn.Linear's (out, in)
    weight; b1, b2 are (D,) or (1, D).
    """
    w1 = jnp.asarray(w1, jnp.float32)
    w2 = jnp.asarray(w2, jnp.float32)
    D = w1.shape[0]
    Dp = _round_up(D, lane_multiple)
    pad = Dp - D

    def pad_w(w):
        return (jnp.pad(w, ((0, pad), (0, pad))) if pad else w).astype(matmul_dtype)

    def pad_b(b):
        b = jnp.asarray(b, jnp.float32).reshape(1, D)
        return jnp.pad(b, ((0, 0), (0, pad))) if pad else b

    return {
        "w1": pad_w(w1), "b1": pad_b(b1), "w2": pad_w(w2), "b2": pad_b(b2),
        "D": D, "Dp": Dp, "matmul_dtype": jnp.dtype(matmul_dtype),
    }


def residual_block(x, params, *, block_b=None, block_h=None):
    """x: (B, D) -> (B, D); params from prepare_params()."""
    B, D = x.shape
    assert D == params["D"], "feature dim mismatch with prepared params"
    Dp = params["Dp"]
    matmul_dtype = params["matmul_dtype"]
    w_item = matmul_dtype.itemsize

    # --- batch tile (no batch padding: ragged last tile is masked by Pallas) ---
    if block_b is None:
        block_b = 512                      # amortizes ~0.35us/step grid overhead
    if B <= block_b:
        block_b = B                        # full-extent block, allowed for any B
    else:
        block_b = _round_up(block_b, F32_SUB)
    grid_b = pl.cdiv(B, block_b)

    # --- VMEM budget & hidden-dim tile ---
    capacity = _vmem_capacity_bytes()
    budget = int(0.80 * capacity)          # headroom for compiler internal scratch
    if block_h is None:
        block_h = _choose_block_h(Dp, block_b, w_item, budget)
    assert Dp % block_h == 0, "block_h must divide the padded feature dim"
    grid_h = Dp // block_h
    resident = grid_h == 1                 # weight blocks are grid-invariant

    need = _vmem_need_bytes(block_b, block_h, Dp, w_item, resident)
    vmem_limit = int(min(max(int(1.25 * need), 32 << 20), int(0.85 * capacity)))

    # --- feature padding for x only when needed ---
    x_p = x.astype(jnp.float32)
    if Dp != D:
        x_p = jnp.pad(x_p, ((0, 0), (0, Dp - D)))

    cost = pl.CostEstimate(
        flops=4 * B * Dp * Dp,             # two (B,Dp)x(Dp,Dp) matmuls
        transcendentals=0,
        bytes_accessed=(2 * B * Dp * 4
                        + (1 if resident else grid_b) * 2 * Dp * Dp * w_item
                        + 2 * Dp * 4),
    )

    out = pl.pallas_call(
        functools.partial(_residual_block_kernel, matmul_dtype=matmul_dtype),
        out_shape=jax.ShapeDtypeStruct((B, Dp), jnp.float32),
        grid_spec=pltpu.PrefetchScalarGridSpec(
            num_scalar_prefetch=0,
            grid=(grid_b, grid_h),
            in_specs=[
                _spec((block_b, Dp), lambda i, j: (i, 0)),                            # x (streamed)
                _spec((Dp, block_h), lambda i, j: (0, j), single_buffered=resident),  # w1
                _spec((1, block_h), lambda i, j: (0, j), single_buffered=resident),   # b1
                _spec((block_h, Dp), lambda i, j: (j, 0), single_buffered=resident),  # w2
                _spec((1, Dp), lambda i, j: (0, 0), single_buffered=True),            # b2 (constant)
            ],
            out_specs=pl.BlockSpec((block_b, Dp), lambda i, j: (i, 0)),
            scratch_shapes=[pltpu.VMEM((block_b, Dp), jnp.float32)],
        ),
        compiler_params=pltpu.CompilerParams(
            dimension_semantics=("parallel", "arbitrary"),   # megacore over batch tiles
            vmem_limit_bytes=vmem_limit,
        ),
        cost_estimate=cost,
    )(x_p, params["w1"], params["b1"], params["w2"], params["b2"])

    # TODO(synk): when grid_b == 1 on v7x, also split the output-feature dim into a
    #             second "parallel" axis so both TensorCores get work.
    if Dp != D:
        out = out[:, :D]
    return out.astype(x.dtype)


def reference_residual_block(x, w1, b1, w2, b2, matmul_dtype=jnp.float32):
    """Pure-JAX reference matching the PyTorch module (w1/w2 laid out (in, out))."""
    b1 = jnp.asarray(b1, jnp.float32).reshape(1, -1)
    b2 = jnp.asarray(b2, jnp.float32).reshape(1, -1)
    h = jnp.dot(x.astype(matmul_dtype), jnp.asarray(w1).astype(matmul_dtype),
                preferred_element_type=jnp.float32) + b1
    h = jnp.where(h >= 0, h, LEAKY_SLOPE * h)
    y = jnp.dot(h.astype(matmul_dtype), jnp.asarray(w2).astype(matmul_dtype),
                preferred_element_type=jnp.float32) + b2
    return x + y


if __name__ == "__main__":
    key = jax.random.PRNGKey(0)

    def make_inputs(k, B, D):
        kx, kw1, kb1, kw2, kb2 = jax.random.split(k, 5)
        bound = 1.0 / float(D) ** 0.5
        x = jax.random.normal(kx, (B, D), jnp.float32)
        # nn.Linear init: weight is (out, in); transpose to (in, out) for the kernel.
        w1 = jax.random.uniform(kw1, (D, D), jnp.float32, -bound, bound).T
        b1 = jax.random.uniform(kb1, (D,), jnp.float32, -bound, bound)
        w2 = jax.random.uniform(kw2, (D, D), jnp.float32, -bound, bound).T
        b2 = jax.random.uniform(kb2, (D,), jnp.float32, -bound, bound)
        return x, w1, b1, w2, b2

    k1, k2 = jax.random.split(key)

    # --- test 1: small shape, weights VMEM-resident (grid = (1, 1)) ---
    x, w1, b1, w2, b2 = make_inputs(k1, B=8, D=32)
    ref_f32 = reference_residual_block(x, w1, b1, w2, b2, jnp.float32)

    p_f32 = prepare_params(w1, b1, w2, b2, matmul_dtype=jnp.float32)
    out = jax.block_until_ready(residual_block(x, p_f32))
    assert out.shape == (8, 32)
    assert jnp.allclose(out, ref_f32, atol=1e-5, rtol=1e-5), "f32 mismatch (resident path)"

    p_bf16 = prepare_params(w1, b1, w2, b2)            # bf16 MXU operands (default)
    out = jax.block_until_ready(residual_block(x, p_bf16))
    ref_bf16 = reference_residual_block(x, w1, b1, w2, b2, jnp.bfloat16)
    assert jnp.allclose(out, ref_bf16, atol=1e-2, rtol=1e-2), "bf16 mismatch (resident path)"
    assert jnp.allclose(out, ref_f32, atol=5e-2, rtol=5e-2), "bf16 drifted from f32"

    # --- test 2: ragged batch + hidden-dim tiling (grid = (2, 2)) ---
    x, w1, b1, w2, b2 = make_inputs(k2, B=20, D=256)
    ref_f32 = reference_residual_block(x, w1, b1, w2, b2, jnp.float32)

    p_f32 = prepare_params(w1, b1, w2, b2, matmul_dtype=jnp.float32)
    out = jax.block_until_ready(residual_block(x, p_f32, block_b=16, block_h=128))
    assert out.shape == (20, 256)
    assert jnp.allclose(out, ref_f32, atol=1e-4, rtol=1e-4), "f32 mismatch (tiled path)"

    p_bf16 = prepare_params(w1, b1, w2, b2)
    out = jax.block_until_ready(residual_block(x, p_bf16, block_b=16, block_h=128))
    ref_bf16 = reference_residual_block(x, w1, b1, w2, b2, jnp.bfloat16)
    assert jnp.allclose(out, ref_bf16, atol=2e-2, rtol=2e-2), "bf16 mismatch (tiled path)"

    print("KERNEL_OK")
</pallas_src>

<mosaic_0001>
module attributes {stable_mosaic.version = 11 : i64} {
  func.func @_residual_block_kernel(%arg0: i32, %arg1: i32, %arg2: memref<8x128xf32, #tpu.memory_space<vmem>>, %arg3: memref<128x128xf32, #tpu.memory_space<vmem>>, %arg4: memref<1x128xf32, #tpu.memory_space<vmem>>, %arg5: memref<128x128xf32, #tpu.memory_space<vmem>>, %arg6: memref<1x128xf32, #tpu.memory_space<vmem>>, %arg7: memref<8x128xf32, #tpu.memory_space<vmem>>, %arg8: memref<8x128xf32, #tpu.memory_space<vmem>>) attributes {dimension_semantics = [#tpu.dimension_semantics<parallel>, #tpu.dimension_semantics<arbitrary>], iteration_bounds = array<i64: 1, 1>, scalar_prefetch = 0 : i64, scratch_operands = 1 : i64, tpu.core_type = #tpu.core_type<tc>, window_params = [{transform_indices = @transform_0, window_bounds = array<i64: 8, 128>}, {pipeline_mode = #tpu.pipeline_mode<synchronous>, transform_indices = @transform_1, window_bounds = array<i64: 128, 128>}, {pipeline_mode = #tpu.pipeline_mode<synchronous>, transform_indices = @transform_2, window_bounds = array<i64: 1, 128>}, {pipeline_mode = #tpu.pipeline_mode<synchronous>, transform_indices = @transform_3, window_bounds = array<i64: 128, 128>}, {pipeline_mode = #tpu.pipeline_mode<synchronous>, transform_indices = @transform_4, window_bounds = array<i64: 1, 128>}, {transform_indices = @transform_5, window_bounds = array<i64: 8, 128>}]} {
    %c0_i32 = arith.constant 0 : i32
    %0 = arith.cmpi eq, %arg1, %c0_i32 : i32
    %1 = arith.extui %0 : i1 to i32
    %c0_i32_0 = arith.constant 0 : i32
    %2 = arith.cmpi ne, %1, %c0_i32_0 : i32
    scf.if %2 {
      %cst_17 = arith.constant 0.000000e+00 : f32
      %22 = vector.broadcast %cst_17 : f32 to vector<8x128xf32>
      %c0_18 = arith.constant 0 : index
      %c0_19 = arith.constant 0 : index
      %23 = vector.load %arg8[%c0_18, %c0_19] : memref<8x128xf32, #tpu.memory_space<vmem>>, vector<8x128xf32>
      tpu.vector_store %arg8[%c0_18, %c0_19], %22 {strides = array<i32>} : memref<8x128xf32, #tpu.memory_space<vmem>>, vector<8x128xf32>,
    } else {
    }
    %c0 = arith.constant 0 : index
    %c0_1 = arith.constant 0 : index
    %3 = vector.load %arg2[%c0, %c0_1] : memref<8x128xf32, #tpu.memory_space<vmem>>, vector<8x128xf32>
    %c0_2 = arith.constant 0 : index
    %c0_3 = arith.constant 0 : index
    %4 = vector.load %arg3[%c0_2, %c0_3] : memref<128x128xf32, #tpu.memory_space<vmem>>, vector<128x128xf32>
    %cst = arith.constant dense<0.000000e+00> : vector<8x128xf32>
    %5 = tpu.matmul %3, %4, %cst {dimension_numbers = #tpu.dot_dimension_numbers<[1], [0], [0], [1], [0, 0, 1, 1], [], []>} : vector<8x128xf32>, vector<128x128xf32>, vector<8x128xf32> -> vector<8x128xf32>
    %c0_4 = arith.constant 0 : index
    %c0_5 = arith.constant 0 : index
    %6 = vector.load %arg4[%c0_4, %c0_5] : memref<1x128xf32, #tpu.memory_space<vmem>>, vector<1x128xf32>
    %7 = vector.broadcast %6 : vector<1x128xf32> to vector<8x128xf32>
    %8 = arith.addf %5, %7 : vector<8x128xf32>
    %cst_6 = arith.constant 0.000000e+00 : f32
    %9 = vector.broadcast %cst_6 : f32 to vector<8x128xf32>
    %10 = arith.cmpf oge, %8, %9 : vector<8x128xf32>
    %cst_7 = arith.constant 0.00999999977 : f32
    %11 = vector.broadcast %cst_7 : f32 to vector<8x128xf32>
    %12 = arith.mulf %11, %8 : vector<8x128xf32>
    %13 = arith.select %10, %8, %12 : vector<8x128xi1>, vector<8x128xf32>
    %c0_8 = arith.constant 0 : index
    %c0_9 = arith.constant 0 : index
    %14 = vector.load %arg8[%c0_8, %c0_9] : memref<8x128xf32, #tpu.memory_space<vmem>>, vector<8x128xf32>
    %c0_10 = arith.constant 0 : index
    %c0_11 = arith.constant 0 : index
    %15 = vector.load %arg5[%c0_10, %c0_11] : memref<128x128xf32, #tpu.memory_space<vmem>>, vector<128x128xf32>
    %cst_12 = arith.constant dense<0.000000e+00> : vector<8x128xf32>
    %16 = tpu.matmul %13, %15, %cst_12 {dimension_numbers = #tpu.dot_dimension_numbers<[1], [0], [0], [1], [0, 0, 1, 1], [], []>} : vector<8x128xf32>, vector<128x128xf32>, vector<8x128xf32> -> vector<8x128xf32>
    %17 = arith.addf %14, %16 : vector<8x128xf32>
    %c0_13 = arith.constant 0 : index
    %c0_14 = arith.constant 0 : index
    %18 = vector.load %arg8[%c0_13, %c0_14] : memref<8x128xf32, #tpu.memory_space<vmem>>, vector<8x128xf32>
    tpu.vector_store %arg8[%c0_13, %c0_14], %17 {strides = array<i32>} : memref<8x128xf32, #tpu.memory_space<vmem>>, vector<8x128xf32>,
    %c0_i32_15 = arith.constant 0 : i32
    %19 = arith.cmpi eq, %arg1, %c0_i32_15 : i32
    %20 = arith.extui %19 : i1 to i32
    %c0_i32_16 = arith.constant 0 : i32
    %21 = arith.cmpi ne, %20, %c0_i32_16 : i32
    scf.if %21 {
      %c0_17 = arith.constant 0 : index
      %c0_18 = arith.constant 0 : index
      %22 = vector.load %arg8[%c0_17, %c0_18] : memref<8x128xf32, #tpu.memory_space<vmem>>, vector<8x128xf32>
      %23 = arith.addf %3, %22 : vector<8x128xf32>
      %c0_19 = arith.constant 0 : index
      %c0_20 = arith.constant 0 : index
      %24 = vector.load %arg6[%c0_19, %c0_20] : memref<1x128xf32, #tpu.memory_space<vmem>>, vector<1x128xf32>
      %25 = vector.broadcast %24 : vector<1x128xf32> to vector<8x128xf32>
      %26 = arith.addf %23, %25 : vector<8x128xf32>
      %c0_21 = arith.constant 0 : index
      %c0_22 = arith.constant 0 : index
      %27 = vector.load %arg7[%c0_21, %c0_22] : memref<8x128xf32, #tpu.memory_space<vmem>>, vector<8x128xf32>
      tpu.vector_store %arg7[%c0_21, %c0_22], %26 {strides = array<i32>} : memref<8x128xf32, #tpu.memory_space<vmem>>, vector<8x128xf32>,
    } else {
    }
    return
  }
  func.func @transform_0(%arg0: i32, %arg1: i32) -> (i32, i32) {
    %c0_i32 = arith.constant 0 : i32
    %c0_i32_0 = arith.constant 0 : i32
    return %arg0, %c0_i32 : i32, i32
  }
  func.func @transform_1(%arg0: i32, %arg1: i32) -> (i32, i32) {
    %c0_i32 = arith.constant 0 : i32
    %c0_i32_0 = arith.constant 0 : i32
    return %c0_i32, %arg1 : i32, i32
  }
  func.func @transform_2(%arg0: i32, %arg1: i32) -> (i32, i32) {
    %c0_i32 = arith.constant 0 : i32
    %c0_i32_0 = arith.constant 0 : i32
    return %c0_i32, %arg1 : i32, i32
  }
  func.func @transform_3(%arg0: i32, %arg1: i32) -> (i32, i32) {
    %c0_i32 = arith.constant 0 : i32
    %c0_i32_0 = arith.constant 0 : i32
    return %arg1, %c0_i32 : i32, i32
  }
  func.func @transform_4(%arg0: i32, %arg1: i32) -> (i32, i32) {
    %c0_i32 = arith.constant 0 : i32
    %c0_i32_0 = arith.constant 0 : i32
    %c0_i32_1 = arith.constant 0 : i32
    return %c0_i32, %c0_i32_0 : i32, i32
  }
  func.func @transform_5(%arg0: i32, %arg1: i32) -> (i32, i32) {
    %c0_i32 = arith.constant 0 : i32
    %c0_i32_0 = arith.constant 0 : i32
    return %arg0, %c0_i32 : i32, i32
  }
}

</mosaic_0001>

<bundles_post_ra>
// kernel: tpu_custom_call.1
= control target key start
LH: loop header
LB: loop body
LE: loop exit
PB: predicated region body
PF: predicated region fallthrough
CT: control target
= control target key end

     0   :  { %10 = vsyncpa [#allocation4], 0  ;;  %s653_s0 = inlined_call_operand.hbm [shape: f32[8,128], index: 0, kind: input, shape index: {}]   ;;  %s654_s1 = inlined_call_operand.hbm [shape: f32[128,128], index: 1, kind: input, shape index: {}]   ;;  %s655_s2 = inlined_call_operand.vmem [shape: f32[1,128], index: 2, kind: input, shape index: {}]   ;;  %s656_s3 = inlined_call_operand.hbm [shape: f32[128,128], index: 3, kind: input, shape index: {}]   ;;  %s657_s4 = inlined_call_operand.vmem [shape: f32[1,128], index: 4, kind: input, shape index: {}]   ;;  %s658_s5 = inlined_call_operand.hbm [shape: f32[8,128], index: 5, kind: output, shape index: {}]  }
   0x1   :  { %11 = vsyncpa [#allocation7], 0 }
   0x2   :  { %12 = vsyncpa [#allocation5], 0  ;;  %s538_s18 = smov [#allocation6]   ;;  %s444_s22 = scalar_lea.hbm %s654_s1, 2048 }
   0x3   :  { %s28_s19 = sshll.u32 %s538_s18, 4  ;;  %p445_p0 = scmp.ne.s32.totalorder %s654_s1, %s444_s22  ;;  %s29_s19 = int_to_ptr.vmem [resolvable:$true] %s28_s19 }
   0x4   :  { %p448_p1 = scmp.lt.u32.totalorder %s444_s22, %s654_s1 }
   0x6   :  { %p450_p2 = pnand %p448_p1, %p445_p0 }
   0x8   :  { %453 = shalt.err (!%p450_p2)
}
   0x9   :  { %s454_s27 = scalar_lea.vmem %s29_s19, 2048  ;;  %p459_p4 = scmp.lt.s32.totalorder %s29_s19, %s29_s19 }
   0xa   :  { %p455_p3 = scmp.ne.s32.totalorder %s29_s19, %s454_s27  ;;  %p460_p5 = scmp.lt.s32.totalorder %s454_s27, %s454_s27 }
   0xc   :  { %p461_p6 = por %p460_p5, %p459_p4 }
   0xe   :  { %p462_p7 = pnand %p461_p6, %p455_p3 }
  0x10   :  { %465 = shalt.err (!%p462_p7)
}
  0x11   :  { %s539_s28 = smov 128   ;;  %s540_s29 = smov 8  }
  0x12   :  { %34 = dma.hbm_to_vmem [thread:$0]  %s654_s1, 2048, %s29_s19, [#allocation7], %s539_s28, %s539_s28, %s540_s29  }
  0x13   :  { %s541_s7 = smov [#allocation3]   ;;  %s542_s9 = smov [#allocation8]  }
  0x14   :  { %s19_s8 = sshll.u32 %s541_s7, 4  ;;  %s42_s10 = sshll.u32 %s542_s9, 4  ;;  %s20_s8 = int_to_ptr.vmem [resolvable:$true] %s19_s8  ;;  %s43_s10 = int_to_ptr.vmem [resolvable:$true] %s42_s10 }
  0x15   :  { %s466_s13 = scalar_lea.hbm %s653_s0, 128 }
  0x16   :  { %p467_p8 = scmp.ne.s32.totalorder %s653_s0, %s466_s13  ;;  %p470_p9 = scmp.lt.u32.totalorder %s466_s13, %s653_s0 }
  0x18   :  { %p472_p10 = pnand %p470_p9, %p467_p8 }
  0x1a   :  { %475 = shalt.err (!%p472_p10)
}
  0x1b   :  { %s476_s1 = scalar_lea.vmem %s20_s8, 128  ;;  %p481_p12 = scmp.lt.s32.totalorder %s20_s8, %s20_s8 }
  0x1c   :  { %p477_p11 = scmp.ne.s32.totalorder %s20_s8, %s476_s1  ;;  %p482_p13 = scmp.lt.s32.totalorder %s476_s1, %s476_s1 }
  0x1e   :  { %p483_p0 = por %p482_p13, %p481_p12 }
  0x20   :  { %p484_p1 = pnand %p483_p0, %p477_p11 }
  0x22   :  { %487 = shalt.err (!%p484_p1)
}
  0x23   :  { %22 = dma.hbm_to_vmem [thread:$0]  %s653_s0, 128, %s20_s8, [#allocation4]  }
  0x24   :  { %s488_s22 = scalar_lea.hbm %s656_s3, 2048 }
  0x25   :  { %p489_p2 = scmp.ne.s32.totalorder %s656_s3, %s488_s22  ;;  %p492_p3 = scmp.lt.u32.totalorder %s488_s22, %s656_s3 }
  0x27   :  { %p494_p4 = pnand %p492_p3, %p489_p2 }
  0x29   :  { %497 = shalt.err (!%p494_p4)
}
  0x2a   :  { %s498_s27 = scalar_lea.vmem %s43_s10, 2048  ;;  %p503_p6 = scmp.lt.s32.totalorder %s43_s10, %s43_s10 }
  0x2b   :  { %p499_p5 = scmp.ne.s32.totalorder %s43_s10, %s498_s27  ;;  %p504_p7 = scmp.lt.s32.totalorder %s498_s27, %s498_s27 }
  0x2d   :  { %p505_p8 = por %p504_p7, %p503_p6 }
  0x2f   :  { %p506_p9 = pnand %p505_p8, %p499_p5 }
  0x31   :  { %509 = shalt.err (!%p506_p9)
}
  0x32   :  { %48 = dma.hbm_to_vmem [thread:$0]  %s656_s3, 2048, %s43_s10, [#allocation7], %s539_s28, %s539_s28, %s540_s29  }
  0x33   :  { %532 = dma.done.wait [#allocation4], 128  }
  0x34   :  { %533 = vsyncadd [#allocation4], 4294967168 }
  0x35   :  { %534 = dma.done.wait [#allocation7], 4096  }
  0x36   :  { %535 = vsyncadd [#allocation7], 4294963200  ;;  %v543_v0 = vmov 0.0|0.0   ;;  %vm544_vm0 = vmmov 0   ;;  %v545_v1 = vmov 0.0   ;;  %v66_v2 = vld [vmem:[#allocation6] sm:$0xff] }
  0x37   :  { %387 = vmatprep.subr.bf16.mxu0 %v543_v0  ;;  %349 = vmatprep.mubr.msk.f32.mxu0 %vm544_vm0, %v545_v1  ;;  %v67_v3 = vld [vmem:[#allocation6 + $0x8] sm:$0xff]  ;;  %v68_v4 = vld [vmem:[#allocation6 + $0x10] sm:$0xff]  ;;  %v69_v6 = vld [vmem:[#allocation6 + $0x18] sm:$0xff]  ;;  %s546_s7 = smov [#allocation9]  }
  0x38   :  { %411 = vmatprep.subr.bf16.mxu1 %v543_v0  ;;  %384 = vmatprep.mubr.msk.f32.mxu1 %vm544_vm0, %v545_v1  ;;  %v388_v5 = vpack.c.bf16 %v67_v3, %v66_v2  ;;  %v391_v7 = vpack.c.bf16 %v69_v6, %v68_v4  ;;  %v70_v8 = vld [vmem:[#allocation6 + $0x20] sm:$0xff]  ;;  %v71_v9 = vld [vmem:[#allocation6 + $0x28] sm:$0xff]  ;;  %v165_v12 = vld [vmem:[#allocation8 + $0x10] sm:$0xff]  ;;  %s271_s8 = sshll.u32 %s546_s7, 4  ;;  %s272_s8 = int_to_ptr.vmem [resolvable:$true] %s271_s8 }
  0x39   :  { %v163_v10 = vld [vmem:[#allocation8] sm:$0xff]  ;;  %v164_v11 = vld [vmem:[#allocation8 + $0x8] sm:$0xff]  ;;  %v166_v13 = vld [vmem:[#allocation8 + $0x18] sm:$0xff]  ;;  %v394_v14 = vpack.c.bf16 %v71_v9, %v70_v8  ;;  %p515_p11 = scmp.lt.s32.totalorder %s272_s8, %s272_s8 }
  0x3a   :  { %389 = vmatpush3.bf16.msra.mxu0 %v388_v5  ;;  %v412_v15 = vpack.c.bf16 %v164_v11, %v163_v10  ;;  %v72_v16 = vld [vmem:[#allocation6 + $0x30] sm:$0xff]  ;;  %v73_v17 = vld [vmem:[#allocation6 + $0x38] sm:$0xff]  ;;  %v415_v18 = vpack.c.bf16 %v166_v13, %v165_v12  ;;  %v167_v19 = vld [vmem:[#allocation8 + $0x20] sm:$0xff] }
  0x3b   :  { %390 = vmatprep.subr.bf16.mxu0 %v543_v0  ;;  %v168_v20 = vld [vmem:[#allocation8 + $0x28] sm:$0xff]  ;;  %v397_v21 = vpack.c.bf16 %v73_v17, %v72_v16  ;;  %v74_v22 = vld [vmem:[#allocation6 + $0x40] sm:$0xff]  ;;  %v169_v25 = vld [vmem:[#allocation8 + $0x30] sm:$0xff] }
  0x3c   :  { %413 = vmatpush3.bf16.msra.mxu1 %v412_v15  ;;  %v75_v23 = vld [vmem:[#allocation6 + $0x48] sm:$0xff]  ;;  %v418_v24 = vpack.c.bf16 %v168_v20, %v167_v19  ;;  %v170_v26 = vld [vmem:[#allocation8 + $0x38] sm:$0xff]  ;;  %v76_v28 = vld [vmem:[#allocation6 + $0x50] sm:$0xff] }
  0x3d   :  { %414 = vmatprep.subr.bf16.mxu1 %v543_v0  ;;  %v400_v27 = vpack.c.bf16 %v75_v23, %v74_v22  ;;  %v77_v29 = vld [vmem:[#allocation6 + $0x58] sm:$0xff]  ;;  %v421_v30 = vpack.c.bf16 %v170_v26, %v169_v25  ;;  %v171_v31 = vld [vmem:[#allocation8 + $0x40] sm:$0xff]  ;;  %v172_v32 = vld [vmem:[#allocation8 + $0x48] sm:$0xff] }
  0x3e   :  { %392 = vmatpush3.bf16.msra.mxu0 %v391_v7  ;;  %v403_v33 = vpack.c.bf16 %v77_v29, %v76_v28  ;;  %v78_v34 = vld [vmem:[#allocation6 + $0x60] sm:$0xff]  ;;  %v79_v35 = vld [vmem:[#allocation6 + $0x68] sm:$0xff]  ;;  %v424_v36 = vpack.c.bf16 %v172_v32, %v171_v31  ;;  %v173_v37 = vld [vmem:[#allocation8 + $0x50] sm:$0xff] }
  0x3f   :  { %393 = vmatprep.subr.bf16.mxu0 %v543_v0  ;;  %v174_v38 = vld [vmem:[#allocation8 + $0x58] sm:$0xff]  ;;  %v406_v39 = vpack.c.bf16 %v79_v35, %v78_v34  ;;  %v80_v40 = vld [vmem:[#allocation6 + $0x70] sm:$0xff]  ;;  %v175_v43 = vld [vmem:[#allocation8 + $0x60] sm:$0xff] }
  0x40   :  { %416 = vmatpush3.bf16.msra.mxu1 %v415_v18  ;;  %v81_v41 = vld [vmem:[#allocation6 + $0x78] sm:$0xff]  ;;  %v427_v42 = vpack.c.bf16 %v174_v38, %v173_v37  ;;  %v176_v44 = vld [vmem:[#allocation8 + $0x68] sm:$0xff]  ;;  %v177_v48 = vld [vmem:[#allocation8 + $0x70] sm:$0xff] }
  0x41   :  { %417 = vmatprep.subr.bf16.mxu1 %v543_v0  ;;  %v409_v45 = vpack.c.bf16 %v81_v41, %v80_v40  ;;  %v430_v46 = vpack.c.bf16 %v176_v44, %v175_v43  ;;  %v65_v47 = vld [vmem:[#allocation3] sm:$0xff] }
  0x42   :  { %395 = vmatpush3.bf16.msra.mxu0 %v394_v14  ;;  %v178_v49 = vld [vmem:[#allocation8 + $0x78] sm:$0xff] }
  0x43   :  { %396 = vmatprep.subr.bf16.mxu0 %v543_v0  ;;  %v433_v50 = vpack.c.bf16 %v178_v49, %v177_v48  ;;  %v281_v51 = vld [vmem:[%s655_s2] ss:$0 sm:$0xff]  ;;  %s510_s2 = scalar_lea.vmem %s272_s8, 128 }
  0x44   :  { %419 = vmatpush3.bf16.msra.mxu1 %v418_v24  ;;  %v282_v58 = vld [vmem:[%s657_s4] ss:$0 sm:$0xff]  ;;  %p511_p10 = scmp.ne.s32.totalorder %s272_s8, %s510_s2  ;;  %p516_p12 = scmp.lt.s32.totalorder %s510_s2, %s510_s2 }
  0x45   :  { %420 = vmatprep.subr.bf16.mxu1 %v543_v0 }
  0x46   :  { %398 = vmatpush3.bf16.msra.mxu0 %v397_v21  ;;  %p517_p13 = por %p516_p12, %p515_p11 }
  0x47   :  { %399 = vmatprep.subr.bf16.mxu0 %v543_v0 }
  0x48   :  { %422 = vmatpush3.bf16.msra.mxu1 %v421_v30  ;;  %p518_p0 = pnand %p517_p13, %p511_p10 }
  0x49   :  { %423 = vmatprep.subr.bf16.mxu1 %v543_v0 }
  0x4a   :  { %401 = vmatpush3.bf16.msra.mxu0 %v400_v27 }
  0x4b   :  { %402 = vmatprep.subr.bf16.mxu0 %v543_v0 }
  0x4c   :  { %425 = vmatpush3.bf16.msra.mxu1 %v424_v36 }
  0x4d   :  { %426 = vmatprep.subr.bf16.mxu1 %v543_v0 }
  0x4e   :  { %404 = vmatpush3.bf16.msra.mxu0 %v403_v33 }
  0x4f   :  { %405 = vmatprep.subr.bf16.mxu0 %v543_v0 }
  0x50   :  { %428 = vmatpush3.bf16.msra.mxu1 %v427_v42 }
  0x51   :  { %429 = vmatprep.subr.bf16.mxu1 %v543_v0 }
  0x52   :  { %407 = vmatpush3.bf16.msra.mxu0 %v406_v39 }
  0x53   :  { %408 = vmatprep.subr.bf16.mxu0 %v543_v0 }
  0x54   :  { %431 = vmatpush3.bf16.msra.mxu1 %v430_v46 }
  0x55   :  { %432 = vmatprep.subr.bf16.mxu1 %v543_v0 }
  0x56   :  { %410 = vmatpush3.bf16.msra.mxu0 %v409_v45 }
  0x58   :  { %434 = vmatpush3.bf16.msra.mxu1 %v433_v50 }
  0x59   :  { %350 = vmatmul.mubr.f32.vlgmr.msra.gmra.mrb[0].mxu0 %v65_v47 }
 0x12c   :  { %v155_v52 = vpop.f32.mrb[0].mxu0 }
 0x12d   :  { %v156_v53 = vadd.f32 %v281_v51, %v155_v52  ;;  %v351_v54 = vpop.f32.mrb[1].mxu0 }
 0x12f   :  { %v160_v55 = vmul.f32 0.01, %v156_v53  ;;  %vm159_vm1 = vcmp.ge.f32.partialorder %v156_v53, 0.0 }
 0x131   :  { %v161_v56 = vsel %vm159_vm1, %v156_v53, %v160_v55 }
 0x132   :  { %385 = vmatmul.mubr.f32.vlgmr.msra.gmra.mrb[0].mxu1 %v161_v56 }
 0x205   :  { %v245_v57 = vpop.f32.mrb[0].mxu1 }
 0x206   :  { %v255_v59 = vadd.f32 %v245_v57, %v65_v47  ;;  %v386_v60 = vpop.f32.mrb[1].mxu1 }
 0x208   :  { %v263_v61 = vadd.f32 %v282_v58, %v255_v59 }
 0x20a   :  { %264 = vst [vmem:[#allocation9] sm:$0xff] %v263_v61 }
 0x20b   :  { %521 = shalt.err (!%p518_p0)
}
 0x20c   :  { %s522_s11 = scalar_lea.hbm %s658_s5, 128 }
 0x20d   :  { %p523_p1 = scmp.ne.s32.totalorder %s658_s5, %s522_s11  ;;  %p526_p2 = scmp.lt.u32.totalorder %s522_s11, %s658_s5 }
 0x20f   :  { %p528_p3 = pnand %p526_p2, %p523_p1 }
 0x211   :  { %531 = shalt.err (!%p528_p3)
}
 0x212   :  { %274 = dma.vmem_to_hbm [thread:$0]  %s272_s8, 128, %s658_s5, [#allocation5]  }
 0x213   :  { %536 = dma.done.wait [#allocation5], 128  }
 0x214   :  { %537 = vsyncadd [#allocation5], 4294967168 }
 0x215   :  { %278 = vsyncpa [#allocation4], 1 }
 0x216   :  { %279 = vsyncpa [#allocation7], 1 }
 0x217   :  { %280 = vsyncpa [#allocation5], 1 }

</bundles_post_ra>
